<compile_context>
chip_gen: v6e
topology: v6e:2x2x1
jax: 0.10.0
libtpu: 0.0.40
codegen_flags: <defaults>
</compile_context>

<pallas_src>
import functools
import math

import jax
import jax.numpy as jnp
from jax.experimental import pallas as pl
from jax.experimental.pallas import tpu as pltpu


def _mean_kernel(x_ref, o_ref, acc_ref, *, n_total, fold, d):
    # x_ref  : (TB, TN, fold*D) input tile (current batch block, current N tile)
    # o_ref  : (TB, D)          output block (resident across the N grid axis)
    # acc_ref: (TB, fold*D)     f32 accumulator scratch
    n_idx = pl.program_id(1)

    @pl.when(n_idx == 0)
    def _init():
        acc_ref[...] = jnp.zeros_like(acc_ref)

    # Accumulate partial sums in float32 regardless of the input dtype.
    acc_ref[...] += jnp.sum(x_ref[...].astype(jnp.float32), axis=-2)

    @pl.when(n_idx == pl.num_programs(1) - 1)
    def _finalize():
        acc = acc_ref[...]                          # (TB, fold*D)
        total = acc[:, 0:d]
        for g in range(1, fold):                    # static unroll, fold <= 16
            total = total + acc[:, g * d:(g + 1) * d]
        inv_n = jnp.float32(1.0 / n_total)
        o_ref[...] = (total * inv_n).astype(o_ref.dtype)


def mean_op(x: jax.Array) -> jax.Array:
    """torch.mean(x, dim=-2) for an array of rank >= 2, via a Pallas TPU kernel."""
    if x.ndim < 2:
        raise ValueError("mean_op expects an array of rank >= 2")
    *lead, n, d = x.shape
    b = int(math.prod(lead)) if lead else 1
    xb = x.reshape(b, n, d)
    itemsize = xb.dtype.itemsize

    # Lane-dense fold: pack points into the 128-lane axis when D < 128.
    fold = 1 if d >= 128 else max(1, min(128 // d, 16))
    lane_d = fold * d

    # Batch blocking (amortizes ~0.35us per-grid-step overhead on tiny tiles).
    tb = b if b <= 8 else 8
    b_pad = pl.cdiv(b, tb) * tb

    # N tiling: keep each (double-buffered) input tile at <= ~4 MiB, then
    # re-balance the tile size across tiles so HBM zero-padding stays tiny.
    n_f = pl.cdiv(n, fold)                           # folded point count
    budget = 4 * 1024 * 1024                         # bytes per input buffer
    tn = budget // max(1, tb * lane_d * itemsize)
    tn = max(8, (tn // 8) * 8)                       # sublane-aligned
    if tn >= n_f:
        tn = n_f
    else:
        num_tiles = pl.cdiv(n_f, tn)
        tn = pl.cdiv(n_f, num_tiles)
        tn = pl.cdiv(tn, 8) * 8                      # keep sublane alignment
    n_f_pad = pl.cdiv(n_f, tn) * tn
    n_pad = n_f_pad * fold

    # Zero-pad ragged B / N (zeros don't change the sum; we divide by true N).
    if b_pad != b or n_pad != n:
        xb = jnp.pad(xb, ((0, b_pad - b), (0, n_pad - n), (0, 0)))
    xf = xb.reshape(b_pad, n_f_pad, lane_d)

    grid = (b_pad // tb, n_f_pad // tn)
    kernel = functools.partial(_mean_kernel, n_total=n, fold=fold, d=d)

    out = pl.pallas_call(
        kernel,
        out_shape=jax.ShapeDtypeStruct((b_pad, d), x.dtype),
        grid_spec=pltpu.PrefetchScalarGridSpec(
            num_scalar_prefetch=0,
            grid=grid,
            in_specs=[pl.BlockSpec((tb, tn, lane_d), lambda bi, ni: (bi, ni, 0))],
            out_specs=pl.BlockSpec((tb, d), lambda bi, ni: (bi, 0)),
            scratch_shapes=[pltpu.VMEM((tb, lane_d), jnp.float32)],
        ),
        compiler_params=pltpu.CompilerParams(
            dimension_semantics=("parallel", "arbitrary"),
            vmem_limit_bytes=48 * 1024 * 1024,
        ),
    )(xf)

    out = out[:b]
    return out.reshape(tuple(lead) + (d,))


if __name__ == "__main__":
    key = jax.random.PRNGKey(0)
    # perslay-style layout: batch=2, points(seq)=8, hidden=32
    B, N, D = 2, 8, 32
    x = jax.random.normal(key, (B, N, D), dtype=jnp.float32)

    out = mean_op(x)
    jax.block_until_ready(out)

    ref = jnp.mean(x, axis=-2)          # torch.mean(x, dim=-2)
    assert out.shape == ref.shape == (B, D)
    assert jnp.allclose(out, ref, atol=1e-5, rtol=1e-5)

    # Exercise padding, batch blocking and the multi-step N-reduction path.
    x2 = jax.random.normal(jax.random.PRNGKey(1), (16, 4200, 32), dtype=jnp.float32)
    out2 = mean_op(x2)
    jax.block_until_ready(out2)
    ref2 = jnp.mean(x2, axis=-2)
    assert out2.shape == ref2.shape
    assert jnp.allclose(out2, ref2, atol=1e-4, rtol=1e-4)

    print("KERNEL_OK")
</pallas_src>

<mosaic_0001>
module attributes {stable_mosaic.version = 11 : i64} {
  func.func @_mean_kernel(%arg0: i32, %arg1: i32, %arg2: memref<2x2x128xf32, #tpu.memory_space<vmem>>, %arg3: memref<2x32xf32, #tpu.memory_space<vmem>>, %arg4: memref<2x128xf32, #tpu.memory_space<vmem>>) attributes {dimension_semantics = [#tpu.dimension_semantics<parallel>, #tpu.dimension_semantics<arbitrary>], iteration_bounds = array<i64: 1, 1>, scalar_prefetch = 0 : i64, scratch_operands = 1 : i64, tpu.core_type = #tpu.core_type<tc>, window_params = [{transform_indices = @transform_0, window_bounds = array<i64: 2, 2, 128>}, {transform_indices = @transform_1, window_bounds = array<i64: 2, 32>}]} {
    %c0_i32 = arith.constant 0 : i32
    %0 = arith.cmpi eq, %arg1, %c0_i32 : i32
    %1 = arith.extui %0 : i1 to i32
    %c0_i32_0 = arith.constant 0 : i32
    %2 = arith.cmpi ne, %1, %c0_i32_0 : i32
    scf.if %2 {
      %cst_9 = arith.constant 0.000000e+00 : f32
      %11 = vector.broadcast %cst_9 : f32 to vector<2x128xf32>
      %c0_10 = arith.constant 0 : index
      %c0_11 = arith.constant 0 : index
      %12 = vector.load %arg4[%c0_10, %c0_11] : memref<2x128xf32, #tpu.memory_space<vmem>>, vector<2x128xf32>
      tpu.vector_store %arg4[%c0_10, %c0_11], %11 {strides = array<i32>} : memref<2x128xf32, #tpu.memory_space<vmem>>, vector<2x128xf32>,
    } else {
    }
    %c0 = arith.constant 0 : index
    %c0_1 = arith.constant 0 : index
    %3 = vector.load %arg4[%c0, %c0_1] : memref<2x128xf32, #tpu.memory_space<vmem>>, vector<2x128xf32>
    %c0_2 = arith.constant 0 : index
    %c0_3 = arith.constant 0 : index
    %c0_4 = arith.constant 0 : index
    %4 = vector.load %arg2[%c0_2, %c0_3, %c0_4] : memref<2x2x128xf32, #tpu.memory_space<vmem>>, vector<2x2x128xf32>
    %cst = arith.constant dense<0.000000e+00> : vector<2x128xf32>
    %5 = vector.multi_reduction <add>, %4, %cst [1] : vector<2x2x128xf32> to vector<2x128xf32>
    %6 = arith.addf %3, %5 : vector<2x128xf32>
    %c0_5 = arith.constant 0 : index
    %c0_6 = arith.constant 0 : index
    %7 = vector.load %arg4[%c0_5, %c0_6] : memref<2x128xf32, #tpu.memory_space<vmem>>, vector<2x128xf32>
    tpu.vector_store %arg4[%c0_5, %c0_6], %6 {strides = array<i32>} : memref<2x128xf32, #tpu.memory_space<vmem>>, vector<2x128xf32>,
    %c0_i32_7 = arith.constant 0 : i32
    %8 = arith.cmpi eq, %arg1, %c0_i32_7 : i32
    %9 = arith.extui %8 : i1 to i32
    %c0_i32_8 = arith.constant 0 : i32
    %10 = arith.cmpi ne, %9, %c0_i32_8 : i32
    scf.if %10 {
      %c0_9 = arith.constant 0 : index
      %c0_10 = arith.constant 0 : index
      %11 = vector.load %arg4[%c0_9, %c0_10] : memref<2x128xf32, #tpu.memory_space<vmem>>, vector<2x128xf32>
      %12 = vector.extract_strided_slice %11 {offsets = [0, 0], sizes = [2, 32], strides = [1, 1]} : vector<2x128xf32> to vector<2x32xf32>
      %13 = vector.extract_strided_slice %11 {offsets = [0, 32], sizes = [2, 32], strides = [1, 1]} : vector<2x128xf32> to vector<2x32xf32>
      %14 = arith.addf %12, %13 : vector<2x32xf32>
      %15 = vector.extract_strided_slice %11 {offsets = [0, 64], sizes = [2, 32], strides = [1, 1]} : vector<2x128xf32> to vector<2x32xf32>
      %16 = arith.addf %14, %15 : vector<2x32xf32>
      %17 = vector.extract_strided_slice %11 {offsets = [0, 96], sizes = [2, 32], strides = [1, 1]} : vector<2x128xf32> to vector<2x32xf32>
      %18 = arith.addf %16, %17 : vector<2x32xf32>
      %cst_11 = arith.constant 1.250000e-01 : f32
      %19 = vector.broadcast %cst_11 : f32 to vector<2x32xf32>
      %20 = arith.mulf %18, %19 : vector<2x32xf32>
      %c0_12 = arith.constant 0 : index
      %c0_13 = arith.constant 0 : index
      %21 = vector.load %arg3[%c0_12, %c0_13] : memref<2x32xf32, #tpu.memory_space<vmem>>, vector<2x32xf32>
      tpu.vector_store %arg3[%c0_12, %c0_13], %20 {strides = array<i32>} : memref<2x32xf32, #tpu.memory_space<vmem>>, vector<2x32xf32>,
    } else {
    }
    return
  }
  func.func @transform_0(%arg0: i32, %arg1: i32) -> (i32, i32, i32) {
    %c0_i32 = arith.constant 0 : i32
    %c0_i32_0 = arith.constant 0 : i32
    return %arg0, %arg1, %c0_i32 : i32, i32, i32
  }
  func.func @transform_1(%arg0: i32, %arg1: i32) -> (i32, i32) {
    %c0_i32 = arith.constant 0 : i32
    %c0_i32_0 = arith.constant 0 : i32
    return %arg0, %c0_i32 : i32, i32
  }
}

</mosaic_0001>

<bundles_post_ra>
// kernel: tpu_custom_call.1
= control target key start
LH: loop header
LB: loop body
LE: loop exit
PB: predicated region body
PF: predicated region fallthrough
CT: control target
= control target key end

     0   :  { %6 = vsyncpa [#allocation4], 0  ;;  %s165_s0 = inlined_call_operand.hbm [shape: f32[2,2,128], index: 0, kind: input, shape index: {}]   ;;  %s166_s1 = inlined_call_operand.hbm [shape: f32[2,32], index: 1, kind: output, shape index: {}]  }
   0x1   :  { %7 = vsyncpa [#allocation5], 0  ;;  %s139_s6 = smov [#allocation3]  }
   0x2   :  { %s13_s7 = sshll.u32 %s139_s6, 4  ;;  %s14_s7 = int_to_ptr.vmem [resolvable:$true] %s13_s7 }
   0x3   :  { %s103_s8 = scalar_lea.vmem %s14_s7, 64  ;;  %p108_p1 = scmp.lt.s32.totalorder %s14_s7, %s14_s7 }
   0x4   :  { %p104_p0 = scmp.ne.s32.totalorder %s14_s7, %s103_s8  ;;  %p109_p2 = scmp.lt.s32.totalorder %s103_s8, %s103_s8 }
   0x6   :  { %p110_p3 = por %p109_p2, %p108_p1 }
   0x8   :  { %p111_p4 = pnand %p110_p3, %p104_p0 }
   0xa   :  { %114 = shalt.err (!%p111_p4)
}
   0xb   :  { %s140_s9 = smov 32   ;;  %s141_s10 = smov 2  }
   0xc   :  { %19 = dma.hbm_to_vmem [thread:$0]  %s165_s0, 64, %s14_s7, [#allocation4], %s140_s9, %s140_s9, %s141_s10  }
   0xd   :  { %135 = dma.done.wait [#allocation4], 64  }
   0xe   :  { %136 = vsyncadd [#allocation4], 4294967232  ;;  %v142_v0 = vmov 0.0   ;;  %vm31_vm0 = vcmask 1041408   ;;  %v29_v1 = vld [vmem:[#allocation3] sm:$0x3] }
   0xf   :  { %27 = vst [vmem:[#allocation2] sm:$0x3] %v142_v0  ;;  %v30_v2 = vld [vmem:[#allocation3 + $0x2] sm:$0x3]  ;;  %v32_v3 = vsel %vm31_vm0, %v29_v1, 0.0  ;;  %vm48_vm1 = vcmask 1041409  }
  0x10   :  { %v39_v4 = vsel %vm31_vm0, %v30_v2, 0.0  ;;  %v33_v5 = vrot.slane %v32_v3, 4  ;;  %s143_s0 = smov 96   ;;  %s144_s13 = smov 64   ;;  %vm71_vm2 = vcmask 254976  }
  0x11   :  { %v40_v6 = vrot.slane %v39_v4, 4  ;;  %s145_s14 = smov [#allocation6]  }
  0x12   :  { %v34_v7 = vadd.f32 %v33_v5, %v32_v3  ;;  %s79_s15 = sshll.u32 %s145_s14, 4  ;;  %s80_s15 = int_to_ptr.vmem [resolvable:$true] %s79_s15 }
  0x13   :  { %v41_v8 = vadd.f32 %v40_v6, %v39_v4  ;;  %s115_s16 = scalar_lea.vmem %s80_s15, 32  ;;  %p120_p6 = scmp.lt.s32.totalorder %s80_s15, %s80_s15 }
  0x14   :  { %v35_v9 = vrot.slane %v34_v7, 2  ;;  %p116_p5 = scmp.ne.s32.totalorder %s80_s15, %s115_s16  ;;  %p121_p7 = scmp.lt.s32.totalorder %s115_s16, %s115_s16 }
  0x15   :  { %v42_v10 = vrot.slane %v41_v8, 2 }
  0x16   :  { %v36_v11 = vadd.f32 %v35_v9, %v34_v7  ;;  %v28_v15 = vld [vmem:[#allocation2] sm:$0x3]  ;;  %p122_p8 = por %p121_p7, %p120_p6 }
  0x17   :  { %v43_v12 = vadd.f32 %v42_v10, %v41_v8 }
  0x18   :  { %v37_v13 = vrot.slane %v36_v11, 1  ;;  %p123_p9 = pnand %p122_p8, %p116_p5 }
  0x19   :  { %v44_v14 = vrot.slane %v43_v12, 1 }
  0x1a   :  { %v38_v16 = vadd.f32 %v37_v13, %v36_v11 }
  0x1b   :  { %v45_v17 = vadd.f32 %v44_v14, %v43_v12 }
  0x1d   :  { %v49_v18 = vsel %vm48_vm1, %v45_v17, %v38_v16 }
  0x1e   :  { %v51_v19 = vadd.f32 %v49_v18, %v28_v15 }
  0x20   :  { %52 = vst [vmem:[#allocation2] sm:$0x3] %v51_v19 }
  0x27   :  { %v56_v20 = vld [vmem:[#allocation2] sm:$0x3] }
  0x28   :  { %58 = vrot.lane.b32.xlu0 %v56_v20, %s143_s0  ;;  %66 = vrot.lane.b32.xlu1 %v56_v20, %s140_s9 }
  0x2c   :  { %62 = vrot.lane.b32.xlu0 %v56_v20, %s144_s13 }
  0x9a   :  { %v59_v21 = vpop.permute.xlu0 %58  ;;  %v67_v24 = vpop.permute.xlu1 %66 }
  0x9b   :  { %v61_v22 = vadd.f32 %v59_v21, %v56_v20 }
  0x9e   :  { %v63_v23 = vpop.permute.xlu0 %62 }
  0x9f   :  { %v65_v25 = vadd.f32 %v63_v23, %v61_v22 }
  0xa1   :  { %v69_v26 = vadd.f32 %v67_v24, %v65_v25 }
  0xa3   :  { %v70_v27 = vmul.f32 0.125, %v69_v26 }
  0xa5   :  { %72 = vst.msk [vmem:[#allocation6] sm:$0x3] %vm71_vm2, %v70_v27 }
  0xa6   :  { %126 = shalt.err (!%p123_p9)
}
  0xa7   :  { %82 = dma.vmem_to_hbm [thread:$0]  %s80_s15, 32, %s166_s1, [#allocation5]  }
  0xa8   :  { %137 = dma.done.wait [#allocation5], 32  }
  0xa9   :  { %138 = vsyncadd [#allocation5], 4294967264 }
  0xaa   :  { %86 = vsyncpa [#allocation4], 1 }
  0xab   :  { %87 = vsyncpa [#allocation5], 1 }

</bundles_post_ra>
